<compile_context>
chip_gen: v6e
topology: v6e:2x2x1
jax: 0.10.0
libtpu: 0.0.40
codegen_flags: <defaults>
</compile_context>

<pallas_src>
import jax
import jax.numpy as jnp
from jax.experimental import pallas as pl
from jax.experimental.pallas import tpu as pltpu


_LANE = 128        # lane width: class dim padded to a multiple of this
_SUBLANE = 16      # bf16 sublane packing: batch tiles are multiples of 16 rows
_TILE_B_MAX = 512  # 512-row x tile (bf16, in=1024) is ~1 MiB; 2x-buffered ~2 MiB


def _round_up(n: int, m: int) -> int:
    return ((n + m - 1) // m) * m


def _cdiv(a: int, b: int) -> int:
    return -(-a // b)


def _twonn_kernel(x_ref, w1_ref, b1_ref, w2_ref, b2_ref, w3_ref, b3_ref, o_ref):
    # One batch tile per grid step: three bf16 MXU matmuls with f32 accumulation,
    # bias-add / ReLU on the f32 accumulator (VPU).  Weights stay VMEM-resident
    # across the whole grid (constant index_maps).
    x = x_ref[...]                                                        # bf16

    h1 = jnp.dot(x, w1_ref[...], preferred_element_type=jnp.float32) + b1_ref[...]
    h1 = jnp.maximum(h1, 0.0).astype(jnp.bfloat16)

    h2 = jnp.dot(h1, w2_ref[...], preferred_element_type=jnp.float32) + b2_ref[...]
    h2 = jnp.maximum(h2, 0.0).astype(jnp.bfloat16)

    out = jnp.dot(h2, w3_ref[...], preferred_element_type=jnp.float32) + b3_ref[...]
    o_ref[...] = out.astype(o_ref.dtype)


@jax.jit
def twonn_forward(x, w1, b1, w2, b2, w3, b3):
    # Flatten NCHW -> (B, in_features), same semantics as torch .view(B, -1).
    if x.ndim == 4:
        x = x.reshape(x.shape[0], -1)

    batch, in_features = x.shape
    hid = w1.shape[1]
    num_classes = w3.shape[1]

    # --- bf16 streams for the bandwidth-heavy operands ---------------------
    xb = x.astype(jnp.bfloat16)
    w1b = w1.astype(jnp.bfloat16)
    w2b = w2.astype(jnp.bfloat16)

    # --- lane-pad the class dim to a full 128-lane block (dense stores) ----
    classes_pad = _round_up(num_classes, _LANE)
    if classes_pad != num_classes:
        w3 = jnp.pad(w3, ((0, 0), (0, classes_pad - num_classes)))
        b3 = jnp.pad(b3, ((0, 0), (0, classes_pad - num_classes)))
    w3b = w3.astype(jnp.bfloat16)

    # --- batch tiling: minimal sublane padding, >=2 tiles when possible ----
    # (>=2 grid steps lets the "parallel" axis shard across v7x's 2 TCs; the
    #  512-row cap keeps per-step overhead amortized and VMEM use a few MiB.)
    pb = _round_up(batch, _SUBLANE)
    min_tiles = 2 if pb >= 2 * _SUBLANE else 1
    num_tiles = max(min_tiles, _cdiv(pb, _TILE_B_MAX))
    tile_b = _round_up(_cdiv(pb, num_tiles), _SUBLANE)
    num_tiles = _cdiv(pb, tile_b)
    padded_batch = num_tiles * tile_b
    if padded_batch != batch:
        xb = jnp.pad(xb, ((0, padded_batch - batch), (0, 0)))

    flops = 2 * padded_batch * (in_features * hid + hid * hid + hid * classes_pad)
    bytes_accessed = (
        2 * padded_batch * in_features                                   # x (bf16)
        + 2 * (in_features * hid + hid * hid + hid * classes_pad)        # weights (bf16)
        + 4 * (hid + hid + classes_pad)                                  # biases (f32)
        + 4 * padded_batch * classes_pad                                 # out (f32)
    )

    out = pl.pallas_call(
        _twonn_kernel,
        out_shape=jax.ShapeDtypeStruct((padded_batch, classes_pad), jnp.float32),
        grid=(num_tiles,),
        in_specs=[
            pl.BlockSpec((tile_b, in_features), lambda i: (i, 0)),   # x tile (bf16)
            pl.BlockSpec((in_features, hid), lambda i: (0, 0)),      # w1 (resident)
            pl.BlockSpec((1, hid), lambda i: (0, 0)),                # b1 (f32)
            pl.BlockSpec((hid, hid), lambda i: (0, 0)),              # w2
            pl.BlockSpec((1, hid), lambda i: (0, 0)),                # b2
            pl.BlockSpec((hid, classes_pad), lambda i: (0, 0)),      # w3 (padded)
            pl.BlockSpec((1, classes_pad), lambda i: (0, 0)),        # b3 (padded)
        ],
        out_specs=pl.BlockSpec((tile_b, classes_pad), lambda i: (i, 0)),
        compiler_params=pltpu.CompilerParams(
            dimension_semantics=("parallel",),       # megacore sharding on v7x
            vmem_limit_bytes=32 * 1024 * 1024,       # ~4 MiB actually used at tile_b=512;
        ),                                           # well under v7x's 64 MiB/TC
        cost_estimate=pl.CostEstimate(
            flops=flops, transcendentals=0, bytes_accessed=bytes_accessed
        ),
    )(xb, w1b, b1, w2b, b2, w3b, b3)

    # Strip the batch / class padding.
    return out[:batch, :num_classes]


def init_linear_params(key, in_features, out_features):
    """Deterministic init mimicking torch.nn.Linear defaults.

    Weight, bias ~ U(-1/sqrt(in), 1/sqrt(in)).  Weight stored as (in, out)
    (transpose of PyTorch's (out, in)).
    """
    kw, kb = jax.random.split(key)
    bound = 1.0 / jnp.sqrt(jnp.float32(in_features))
    w = jax.random.uniform(
        kw, (in_features, out_features), jnp.float32, minval=-bound, maxval=bound
    )
    b = jax.random.uniform(
        kb, (1, out_features), jnp.float32, minval=-bound, maxval=bound
    )
    return w, b


def reference_forward_f32(x, w1, b1, w2, b2, w3, b3):
    if x.ndim == 4:
        x = x.reshape(x.shape[0], -1)
    h1 = jnp.maximum(x @ w1 + b1, 0.0)
    h2 = jnp.maximum(h1 @ w2 + b2, 0.0)
    return h2 @ w3 + b3


def reference_forward_bf16(x, w1, b1, w2, b2, w3, b3):
    """Mirrors the kernel's numerics: bf16 operands, f32 MXU accumulation."""
    if x.ndim == 4:
        x = x.reshape(x.shape[0], -1)
    bf = jnp.bfloat16
    f32 = jnp.float32
    h1 = jnp.dot(x.astype(bf), w1.astype(bf), preferred_element_type=f32) + b1
    h1 = jnp.maximum(h1, 0.0).astype(bf)
    h2 = jnp.dot(h1, w2.astype(bf), preferred_element_type=f32) + b2
    h2 = jnp.maximum(h2, 0.0).astype(bf)
    return jnp.dot(h2, w3.astype(bf), preferred_element_type=f32) + b3


if __name__ == "__main__":
    # Small shapes consistent with the module's forward pass.
    batch, channels, spatial = 2, 4, 16
    in_features = channels * spatial * spatial  # 1024 after NCHW flatten
    num_hiddens = 128
    num_classes = 10

    key = jax.random.PRNGKey(0)
    k_x, k1, k2, k3 = jax.random.split(key, 4)

    x = jax.random.normal(k_x, (batch, channels, spatial, spatial), jnp.float32)

    w1, b1 = init_linear_params(k1, in_features, num_hiddens)
    w2, b2 = init_linear_params(k2, num_hiddens, num_hiddens)
    w3, b3 = init_linear_params(k3, num_hiddens, num_classes)

    out = twonn_forward(x, w1, b1, w2, b2, w3, b3)
    out = jax.block_until_ready(out)

    ref_bf16 = reference_forward_bf16(x, w1, b1, w2, b2, w3, b3)
    ref_f32 = reference_forward_f32(x, w1, b1, w2, b2, w3, b3)

    assert out.shape == (batch, num_classes)
    # Tight check vs. a reference with identical numerics (bf16 ops, f32 acc).
    assert jnp.allclose(out, ref_bf16, atol=1e-3, rtol=1e-3)
    # Loose check vs. the pure-f32 reference (bf16 rounding of x / weights).
    assert jnp.allclose(out, ref_f32, atol=5e-2, rtol=5e-2)

    print("KERNEL_OK")
</pallas_src>

<mosaic_0001>
module attributes {stable_mosaic.version = 11 : i64} {
  func.func @_twonn_kernel(%arg0: i32, %arg1: memref<16x1024xbf16, #tpu.memory_space<vmem>>, %arg2: memref<1024x128xbf16, #tpu.memory_space<vmem>>, %arg3: memref<1x128xf32, #tpu.memory_space<vmem>>, %arg4: memref<128x128xbf16, #tpu.memory_space<vmem>>, %arg5: memref<1x128xf32, #tpu.memory_space<vmem>>, %arg6: memref<128x128xbf16, #tpu.memory_space<vmem>>, %arg7: memref<1x128xf32, #tpu.memory_space<vmem>>, %arg8: memref<16x128xf32, #tpu.memory_space<vmem>>) attributes {dimension_semantics = [#tpu.dimension_semantics<parallel>], iteration_bounds = array<i64: 1>, scalar_prefetch = 0 : i64, scratch_operands = 0 : i64, tpu.core_type = #tpu.core_type<tc>, window_params = [{transform_indices = @transform_0, window_bounds = array<i64: 16, 1024>}, {pipeline_mode = #tpu.pipeline_mode<synchronous>, transform_indices = @transform_1, window_bounds = array<i64: 1024, 128>}, {pipeline_mode = #tpu.pipeline_mode<synchronous>, transform_indices = @transform_2, window_bounds = array<i64: 1, 128>}, {pipeline_mode = #tpu.pipeline_mode<synchronous>, transform_indices = @transform_3, window_bounds = array<i64: 128, 128>}, {pipeline_mode = #tpu.pipeline_mode<synchronous>, transform_indices = @transform_4, window_bounds = array<i64: 1, 128>}, {pipeline_mode = #tpu.pipeline_mode<synchronous>, transform_indices = @transform_5, window_bounds = array<i64: 128, 128>}, {pipeline_mode = #tpu.pipeline_mode<synchronous>, transform_indices = @transform_6, window_bounds = array<i64: 1, 128>}, {transform_indices = @transform_7, window_bounds = array<i64: 16, 128>}]} {
    %c0 = arith.constant 0 : index
    %c0_0 = arith.constant 0 : index
    %0 = vector.load %arg1[%c0, %c0_0] : memref<16x1024xbf16, #tpu.memory_space<vmem>>, vector<16x1024xbf16>
    %c0_1 = arith.constant 0 : index
    %c0_2 = arith.constant 0 : index
    %1 = vector.load %arg2[%c0_1, %c0_2] : memref<1024x128xbf16, #tpu.memory_space<vmem>>, vector<1024x128xbf16>
    %cst = arith.constant dense<0.000000e+00> : vector<16x128xf32>
    %2 = tpu.matmul %0, %1, %cst {dimension_numbers = #tpu.dot_dimension_numbers<[1], [0], [0], [1], [0, 0, 1, 1], [], []>} : vector<16x1024xbf16>, vector<1024x128xbf16>, vector<16x128xf32> -> vector<16x128xf32>
    %c0_3 = arith.constant 0 : index
    %c0_4 = arith.constant 0 : index
    %3 = vector.load %arg3[%c0_3, %c0_4] : memref<1x128xf32, #tpu.memory_space<vmem>>, vector<1x128xf32>
    %4 = vector.broadcast %3 : vector<1x128xf32> to vector<16x128xf32>
    %5 = arith.addf %2, %4 : vector<16x128xf32>
    %cst_5 = arith.constant 0.000000e+00 : f32
    %6 = vector.broadcast %cst_5 : f32 to vector<16x128xf32>
    %7 = arith.maximumf %5, %6 : vector<16x128xf32>
    %8 = arith.truncf %7 : vector<16x128xf32> to vector<16x128xbf16>
    %c0_6 = arith.constant 0 : index
    %c0_7 = arith.constant 0 : index
    %9 = vector.load %arg4[%c0_6, %c0_7] : memref<128x128xbf16, #tpu.memory_space<vmem>>, vector<128x128xbf16>
    %cst_8 = arith.constant dense<0.000000e+00> : vector<16x128xf32>
    %10 = tpu.matmul %8, %9, %cst_8 {dimension_numbers = #tpu.dot_dimension_numbers<[1], [0], [0], [1], [0, 0, 1, 1], [], []>} : vector<16x128xbf16>, vector<128x128xbf16>, vector<16x128xf32> -> vector<16x128xf32>
    %c0_9 = arith.constant 0 : index
    %c0_10 = arith.constant 0 : index
    %11 = vector.load %arg5[%c0_9, %c0_10] : memref<1x128xf32, #tpu.memory_space<vmem>>, vector<1x128xf32>
    %12 = vector.broadcast %11 : vector<1x128xf32> to vector<16x128xf32>
    %13 = arith.addf %10, %12 : vector<16x128xf32>
    %cst_11 = arith.constant 0.000000e+00 : f32
    %14 = vector.broadcast %cst_11 : f32 to vector<16x128xf32>
    %15 = arith.maximumf %13, %14 : vector<16x128xf32>
    %16 = arith.truncf %15 : vector<16x128xf32> to vector<16x128xbf16>
    %c0_12 = arith.constant 0 : index
    %c0_13 = arith.constant 0 : index
    %17 = vector.load %arg6[%c0_12, %c0_13] : memref<128x128xbf16, #tpu.memory_space<vmem>>, vector<128x128xbf16>
    %cst_14 = arith.constant dense<0.000000e+00> : vector<16x128xf32>
    %18 = tpu.matmul %16, %17, %cst_14 {dimension_numbers = #tpu.dot_dimension_numbers<[1], [0], [0], [1], [0, 0, 1, 1], [], []>} : vector<16x128xbf16>, vector<128x128xbf16>, vector<16x128xf32> -> vector<16x128xf32>
    %c0_15 = arith.constant 0 : index
    %c0_16 = arith.constant 0 : index
    %19 = vector.load %arg7[%c0_15, %c0_16] : memref<1x128xf32, #tpu.memory_space<vmem>>, vector<1x128xf32>
    %20 = vector.broadcast %19 : vector<1x128xf32> to vector<16x128xf32>
    %21 = arith.addf %18, %20 : vector<16x128xf32>
    %c0_17 = arith.constant 0 : index
    %c0_18 = arith.constant 0 : index
    %22 = vector.load %arg8[%c0_17, %c0_18] : memref<16x128xf32, #tpu.memory_space<vmem>>, vector<16x128xf32>
    tpu.vector_store %arg8[%c0_17, %c0_18], %21 {strides = array<i32>} : memref<16x128xf32, #tpu.memory_space<vmem>>, vector<16x128xf32>,
    return
  }
  func.func @transform_0(%arg0: i32) -> (i32, i32) {
    %c0_i32 = arith.constant 0 : i32
    %c0_i32_0 = arith.constant 0 : i32
    return %arg0, %c0_i32 : i32, i32
  }
  func.func @transform_1(%arg0: i32) -> (i32, i32) {
    %c0_i32 = arith.constant 0 : i32
    %c0_i32_0 = arith.constant 0 : i32
    %c0_i32_1 = arith.constant 0 : i32
    return %c0_i32, %c0_i32_0 : i32, i32
  }
  func.func @transform_2(%arg0: i32) -> (i32, i32) {
    %c0_i32 = arith.constant 0 : i32
    %c0_i32_0 = arith.constant 0 : i32
    %c0_i32_1 = arith.constant 0 : i32
    return %c0_i32, %c0_i32_0 : i32, i32
  }
  func.func @transform_3(%arg0: i32) -> (i32, i32) {
    %c0_i32 = arith.constant 0 : i32
    %c0_i32_0 = arith.constant 0 : i32
    %c0_i32_1 = arith.constant 0 : i32
    return %c0_i32, %c0_i32_0 : i32, i32
  }
  func.func @transform_4(%arg0: i32) -> (i32, i32) {
    %c0_i32 = arith.constant 0 : i32
    %c0_i32_0 = arith.constant 0 : i32
    %c0_i32_1 = arith.constant 0 : i32
    return %c0_i32, %c0_i32_0 : i32, i32
  }
  func.func @transform_5(%arg0: i32) -> (i32, i32) {
    %c0_i32 = arith.constant 0 : i32
    %c0_i32_0 = arith.constant 0 : i32
    %c0_i32_1 = arith.constant 0 : i32
    return %c0_i32, %c0_i32_0 : i32, i32
  }
  func.func @transform_6(%arg0: i32) -> (i32, i32) {
    %c0_i32 = arith.constant 0 : i32
    %c0_i32_0 = arith.constant 0 : i32
    %c0_i32_1 = arith.constant 0 : i32
    return %c0_i32, %c0_i32_0 : i32, i32
  }
  func.func @transform_7(%arg0: i32) -> (i32, i32) {
    %c0_i32 = arith.constant 0 : i32
    %c0_i32_0 = arith.constant 0 : i32
    return %arg0, %c0_i32 : i32, i32
  }
}

</mosaic_0001>

<bundles_post_ra>
// kernel: twonn_forward.1
= control target key start
LH: loop header
LB: loop body
LE: loop exit
PB: predicated region body
PF: predicated region fallthrough
CT: control target
= control target key end

     0   :  { %vm1314_vm0 = vmmov 0   ;;  %s1652_s1 = inlined_call_operand.vmem [shape: bf16[1024,128], index: 1, kind: input, shape index: {}]   ;;  %s1653_s0 = inlined_call_operand.vmem [shape: bf16[16,1024], index: 0, kind: input, shape index: {}]   ;;  %s1654_s3 = inlined_call_operand.vmem [shape: bf16[128,128], index: 3, kind: input, shape index: {}]   ;;  %s1655_s5 = inlined_call_operand.vmem [shape: bf16[128,128], index: 5, kind: input, shape index: {}]   ;;  %s1656_s2 = inlined_call_operand.vmem [shape: f32[1,128], index: 2, kind: input, shape index: {}]   ;;  %s1657_s4 = inlined_call_operand.vmem [shape: f32[1,128], index: 4, kind: input, shape index: {}]   ;;  %s1658_s6 = inlined_call_operand.vmem [shape: f32[1,128], index: 6, kind: input, shape index: {}]   ;;  %s1659_s7 = inlined_call_operand.vmem [shape: f32[16,128], index: 7, kind: output, shape index: {}]  }
   0x1   :  { %v1233_v0 = vld [vmem:[%s1652_s1 + $0x78] sm:$0xff]   ;;  %v1237_v4 = vld [vmem:[%s1652_s1 + $0x70] sm:$0xff]   ;;  %v1241_v8 = vld [vmem:[%s1652_s1 + $0x68] sm:$0xff]  }
   0x2   :  { %v1234_v1 = vld [vmem:[%s1652_s1 + $0xf8] sm:$0xff]   ;;  %1085 = vmatprep.subr.bf16.mxu0 %v1233_v0  ;;  %v1238_v5 = vld [vmem:[%s1652_s1 + $0xf0] sm:$0xff]   ;;  %v1242_v9 = vld [vmem:[%s1652_s1 + $0xe8] sm:$0xff]  }
   0x3   :  { %v1235_v2 = vld [vmem:[%s1652_s1 + $0x38] sm:$0xff]   ;;  %1107 = vmatprep.subr.bf16.mxu1 %v1234_v1  ;;  %v1239_v6 = vld [vmem:[%s1652_s1 + $0x30] sm:$0xff]   ;;  %v1243_v10 = vld [vmem:[%s1652_s1 + $0x28] sm:$0xff]  }
   0x4   :  { %v1236_v3 = vld [vmem:[%s1652_s1 + $0xb8] sm:$0xff]   ;;  %1086 = vmatpush3.bf16.msra.mxu0 %v1235_v2  ;;  %v1240_v7 = vld [vmem:[%s1652_s1 + $0xb0] sm:$0xff]   ;;  %v1244_v11 = vld [vmem:[%s1652_s1 + $0xa8] sm:$0xff]  }
   0x5   :  { %1108 = vmatpush3.bf16.msra.mxu1 %v1236_v3  ;;  %1087 = vmatprep.subr.bf16.mxu0 %v1237_v4  ;;  %v1245_v12 = vld [vmem:[%s1652_s1 + $0x60] sm:$0xff]   ;;  %v1249_v16 = vld [vmem:[%s1652_s1 + $0x58] sm:$0xff]   ;;  %v1253_v20 = vld [vmem:[%s1652_s1 + $0x50] sm:$0xff]  }
   0x6   :  { %1109 = vmatprep.subr.bf16.mxu1 %v1238_v5  ;;  %v1246_v13 = vld [vmem:[%s1652_s1 + $0xe0] sm:$0xff]   ;;  %v1250_v17 = vld [vmem:[%s1652_s1 + $0xd8] sm:$0xff]   ;;  %v1254_v21 = vld [vmem:[%s1652_s1 + $0xd0] sm:$0xff]  }
   0x7   :  { %v1247_v14 = vld [vmem:[%s1652_s1 + $0x20] sm:$0xff]   ;;  %v1251_v18 = vld [vmem:[%s1652_s1 + $0x18] sm:$0xff]   ;;  %v1255_v22 = vld [vmem:[%s1652_s1 + $0x10] sm:$0xff]  }
   0x8   :  { %1088 = vmatpush3.bf16.msra.mxu0 %v1239_v6  ;;  %v1248_v15 = vld [vmem:[%s1652_s1 + $0xa0] sm:$0xff]   ;;  %v1252_v19 = vld [vmem:[%s1652_s1 + $0x98] sm:$0xff]   ;;  %v1256_v23 = vld [vmem:[%s1652_s1 + $0x90] sm:$0xff]  }
   0x9   :  { %1110 = vmatpush3.bf16.msra.mxu1 %v1240_v7  ;;  %1089 = vmatprep.subr.bf16.mxu0 %v1241_v8  ;;  %v1257_v24 = vld [vmem:[%s1652_s1 + $0x48] sm:$0xff]   ;;  %v1261_v28 = vld [vmem:[%s1652_s1 + $0x40] sm:$0xff]   ;;  %v1265_v40 = vld [vmem:[%s1652_s1 + $0x178] sm:$0xff]  }
   0xa   :  { %1111 = vmatprep.subr.bf16.mxu1 %v1242_v9  ;;  %v1258_v25 = vld [vmem:[%s1652_s1 + $0xc8] sm:$0xff]   ;;  %v1262_v29 = vld [vmem:[%s1652_s1 + $0xc0] sm:$0xff]   ;;  %v1266_v41 = vld [vmem:[%s1652_s1 + $0x1f8] sm:$0xff]  }
   0xb   :  { %v1259_v26 = vld [vmem:[%s1652_s1 + $0x8] sm:$0xff]   ;;  %v1263_v30 = vld [vmem:[%s1652_s1] sm:$0xff]   ;;  %v1267_v42 = vld [vmem:[%s1652_s1 + $0x138] sm:$0xff]  }
   0xc   :  { %1090 = vmatpush3.bf16.msra.mxu0 %v1243_v10  ;;  %v1260_v27 = vld [vmem:[%s1652_s1 + $0x88] sm:$0xff]   ;;  %v1264_v31 = vld [vmem:[%s1652_s1 + $0x80] sm:$0xff]   ;;  %v1268_v43 = vld [vmem:[%s1652_s1 + $0x1b8] sm:$0xff]  }
   0xd   :  { %1112 = vmatpush3.bf16.msra.mxu1 %v1244_v11  ;;  %1091 = vmatprep.subr.bf16.mxu0 %v1245_v12  ;;  %v27_v32 = vld [vmem:[%s1653_s0] sm:$0xff]  ;;  %v28_v34 = vld [vmem:[%s1653_s0 + $0x8] sm:$0xff]  ;;  %v1269_v44 = vld [vmem:[%s1652_s1 + $0x170] sm:$0xff]  }
   0xe   :  { %1113 = vmatprep.subr.bf16.mxu1 %v1246_v13  ;;  %v31_v33 = vld [vmem:[%s1653_s0 + $0x20] sm:$0xff]  ;;  %v32_v37 = vld [vmem:[%s1653_s0 + $0x28] sm:$0xff]  ;;  %v1270_v45 = vld [vmem:[%s1652_s1 + $0x1f0] sm:$0xff]  }
   0xf   :  { %v995_v35 = vcombine.low %v27_v32, %v31_v33  ;;  %v996_v36 = vcombine.high %v27_v32, %v31_v33  ;;  %v997_v38 = vcombine.low %v28_v34, %v32_v37  ;;  %v998_v39 = vcombine.high %v28_v34, %v32_v37  ;;  %v1271_v46 = vld [vmem:[%s1652_s1 + $0x130] sm:$0xff]   ;;  %v1273_v48 = vld [vmem:[%s1652_s1 + $0x168] sm:$0xff]   ;;  %v1277_v52 = vld [vmem:[%s1652_s1 + $0x160] sm:$0xff]  }
  0x10   :  { %1092 = vmatpush3.bf16.msra.mxu0 %v1247_v14  ;;  %v1272_v47 = vld [vmem:[%s1652_s1 + $0x1b0] sm:$0xff]   ;;  %v1274_v49 = vld [vmem:[%s1652_s1 + $0x1e8] sm:$0xff]   ;;  %v1278_v53 = vld [vmem:[%s1652_s1 + $0x1e0] sm:$0xff]  }
  0x11   :  { %1114 = vmatpush3.bf16.msra.mxu1 %v1248_v15  ;;  %1093 = vmatprep.subr.bf16.mxu0 %v1249_v16  ;;  %v1275_v50 = vld [vmem:[%s1652_s1 + $0x128] sm:$0xff]   ;;  %v1279_v54 = vld [vmem:[%s1652_s1 + $0x120] sm:$0xff]   ;;  %v1281_v56 = vld [vmem:[%s1652_s1 + $0x158] sm:$0xff]   ;;  %v1313_v16 = vmov 0.0  }
  0x12   :  { %1115 = vmatprep.subr.bf16.mxu1 %v1250_v17  ;;  %626 = vmatprep.mubr.bf16.mxu0 %v996_v36  ;;  %v1276_v51 = vld [vmem:[%s1652_s1 + $0x1a8] sm:$0xff]   ;;  %v1280_v55 = vld [vmem:[%s1652_s1 + $0x1a0] sm:$0xff]   ;;  %v1282_v57 = vld [vmem:[%s1652_s1 + $0x1d8] sm:$0xff]  }
  0x13   :  { %667 = vmatprep.mubr.bf16.mxu1 %v998_v39  ;;  %v1283_v58 = vld [vmem:[%s1652_s1 + $0x118] sm:$0xff]   ;;  %v1285_v60 = vld [vmem:[%s1652_s1 + $0x150] sm:$0xff]   ;;  %v1289_v0 = vld [vmem:[%s1652_s1 + $0x148] sm:$0xff]  }
  0x14   :  { %1094 = vmatpush3.bf16.msra.mxu0 %v1251_v18  ;;  %v1284_v59 = vld [vmem:[%s1652_s1 + $0x198] sm:$0xff]   ;;  %v1286_v61 = vld [vmem:[%s1652_s1 + $0x1d0] sm:$0xff]   ;;  %v1290_v1 = vld [vmem:[%s1652_s1 + $0x1c8] sm:$0xff]  }
  0x15   :  { %1116 = vmatpush3.bf16.msra.mxu1 %v1252_v19  ;;  %1095 = vmatprep.subr.bf16.mxu0 %v1253_v20  ;;  %v1287_v62 = vld [vmem:[%s1652_s1 + $0x110] sm:$0xff]   ;;  %v1291_v2 = vld [vmem:[%s1652_s1 + $0x108] sm:$0xff]   ;;  %v1293_v4 = vld [vmem:[%s1652_s1 + $0x140] sm:$0xff]  }
  0x16   :  { %1117 = vmatprep.subr.bf16.mxu1 %v1254_v21  ;;  %v1288_v63 = vld [vmem:[%s1652_s1 + $0x190] sm:$0xff]   ;;  %v1292_v3 = vld [vmem:[%s1652_s1 + $0x188] sm:$0xff]   ;;  %v1294_v5 = vld [vmem:[%s1652_s1 + $0x1c0] sm:$0xff]  }
  0x17   :  { %v1295_v6 = vld [vmem:[%s1652_s1 + $0x100] sm:$0xff]   ;;  %v29_v8 = vld [vmem:[%s1653_s0 + $0x10] sm:$0xff]  ;;  %v30_v12 = vld [vmem:[%s1653_s0 + $0x18] sm:$0xff] }
  0x18   :  { %1096 = vmatpush3.bf16.msra.mxu0 %v1255_v22  ;;  %v1296_v7 = vld [vmem:[%s1652_s1 + $0x180] sm:$0xff]   ;;  %v33_v9 = vld [vmem:[%s1653_s0 + $0x30] sm:$0xff]  ;;  %v34_v13 = vld [vmem:[%s1653_s0 + $0x38] sm:$0xff] }
  0x19   :  { %1118 = vmatpush3.bf16.msra.mxu1 %v1256_v23  ;;  %1097 = vmatprep.subr.bf16.mxu0 %v1257_v24  ;;  %v999_v10 = vcombine.low %v29_v8, %v33_v9  ;;  %v1000_v11 = vcombine.high %v29_v8, %v33_v9  ;;  %v1001_v14 = vcombine.low %v30_v12, %v34_v13  ;;  %v1297_v17 = vld [vmem:[%s1654_s3 + $0x38] sm:$0xff]   ;;  %v1298_v18 = vld [vmem:[%s1654_s3 + $0x30] sm:$0xff]   ;;  %v1299_v19 = vld [vmem:[%s1654_s3 + $0x28] sm:$0xff]  }
  0x1a   :  { %1119 = vmatprep.subr.bf16.mxu1 %v1258_v25  ;;  %v1002_v15 = vcombine.high %v30_v12, %v34_v13  ;;  %v1300_v20 = vld [vmem:[%s1654_s3 + $0x20] sm:$0xff]   ;;  %v1301_v21 = vld [vmem:[%s1654_s3 + $0x18] sm:$0xff]   ;;  %v1302_v22 = vld [vmem:[%s1654_s3 + $0x10] sm:$0xff]  }
  0x1b   :  { %v1303_v23 = vld [vmem:[%s1654_s3 + $0x8] sm:$0xff]   ;;  %v1304_v24 = vld [vmem:[%s1654_s3] sm:$0xff]   ;;  %v1305_v25 = vld [vmem:[%s1655_s5 + $0x38] sm:$0xff]  }
  0x1c   :  { %1098 = vmatpush3.bf16.msra.mxu0 %v1259_v26  ;;  %v1306_v26 = vld [vmem:[%s1655_s5 + $0x30] sm:$0xff]   ;;  %v994_v37 = vld [vmem:[%s1656_s2] ss:$0 sm:$0xff] }
  0x1d   :  { %1120 = vmatpush3.bf16.msra.mxu1 %v1260_v27  ;;  %1099 = vmatprep.subr.bf16.mxu0 %v1261_v28  ;;  %v1307_v27 = vld [vmem:[%s1655_s5 + $0x28] sm:$0xff]   ;;  %v1308_v28 = vld [vmem:[%s1655_s5 + $0x20] sm:$0xff]  }
  0x1e   :  { %1121 = vmatprep.subr.bf16.mxu1 %v1262_v29  ;;  %v1309_v29 = vld [vmem:[%s1655_s5 + $0x18] sm:$0xff]  }
  0x20   :  { %1100 = vmatpush3.bf16.msra.mxu0 %v1263_v30 }
  0x21   :  { %1122 = vmatpush3.bf16.msra.mxu1 %v1264_v31  ;;  %1129 = vmatprep.subr.bf16.mxu0 %v1265_v40 }
  0x22   :  { %1151 = vmatprep.subr.bf16.mxu1 %v1266_v41 }
  0x23   :  { %627 = vmatmul.mubr.bf16.vlgmr.msra.gmra.mxu0 %v995_v35 }
  0x24   :  { %668 = vmatmul.mubr.bf16.vlgmr.msra.gmra.mxu1 %v997_v38  ;;  %1130 = vmatpush3.bf16.msra.mxu0 %v1267_v42 }
  0x25   :  { %1152 = vmatpush3.bf16.msra.mxu1 %v1268_v43  ;;  %1131 = vmatprep.subr.bf16.mxu0 %v1269_v44 }
  0x26   :  { %1153 = vmatprep.subr.bf16.mxu1 %v1270_v45  ;;  %708 = vmatprep.mubr.bf16.mxu0 %v1000_v11 }
  0x27   :  { %749 = vmatprep.mubr.bf16.mxu1 %v1002_v15  ;;  %v1076_v15 = vld [vmem:[%s1658_s6] ss:$0 sm:$0xff] }
  0x28   :  { %1132 = vmatpush3.bf16.msra.mxu0 %v1271_v46 }
  0x29   :  { %1154 = vmatpush3.bf16.msra.mxu1 %v1272_v47  ;;  %1133 = vmatprep.subr.bf16.mxu0 %v1273_v48 }
  0x2a   :  { %1155 = vmatprep.subr.bf16.mxu1 %v1274_v49 }
  0x2c   :  { %1134 = vmatpush3.bf16.msra.mxu0 %v1275_v50 }
  0x2d   :  { %1156 = vmatpush3.bf16.msra.mxu1 %v1276_v51  ;;  %1135 = vmatprep.subr.bf16.mxu0 %v1277_v52 }
  0x2e   :  { %1157 = vmatprep.subr.bf16.mxu1 %v1278_v53 }
  0x30   :  { %1136 = vmatpush3.bf16.msra.mxu0 %v1279_v54 }
  0x31   :  { %1158 = vmatpush3.bf16.msra.mxu1 %v1280_v55  ;;  %1137 = vmatprep.subr.bf16.mxu0 %v1281_v56 }
  0x32   :  { %1159 = vmatprep.subr.bf16.mxu1 %v1282_v57 }
  0x34   :  { %1138 = vmatpush3.bf16.msra.mxu0 %v1283_v58 }
  0x35   :  { %1160 = vmatpush3.bf16.msra.mxu1 %v1284_v59  ;;  %1139 = vmatprep.subr.bf16.mxu0 %v1285_v60 }
  0x36   :  { %1161 = vmatprep.subr.bf16.mxu1 %v1286_v61 }
  0x38   :  { %1140 = vmatpush3.bf16.msra.mxu0 %v1287_v62 }
  0x39   :  { %1162 = vmatpush3.bf16.msra.mxu1 %v1288_v63  ;;  %1141 = vmatprep.subr.bf16.mxu0 %v1289_v0 }
  0x3a   :  { %1163 = vmatprep.subr.bf16.mxu1 %v1290_v1 }
  0x3c   :  { %1142 = vmatpush3.bf16.msra.mxu0 %v1291_v2  ;;  %v1310_v2 = vld [vmem:[%s1655_s5 + $0x10] sm:$0xff]  }
  0x3d   :  { %1164 = vmatpush3.bf16.msra.mxu1 %v1292_v3  ;;  %1143 = vmatprep.subr.bf16.mxu0 %v1293_v4  ;;  %v1311_v3 = vld [vmem:[%s1655_s5 + $0x8] sm:$0xff]   ;;  %v1312_v4 = vld [vmem:[%s1655_s5] sm:$0xff]  }
  0x3e   :  { %1165 = vmatprep.subr.bf16.mxu1 %v1294_v5  ;;  %v1067_v5 = vld [vmem:[%s1657_s4] ss:$0 sm:$0xff] }
  0x40   :  { %1144 = vmatpush3.bf16.msra.mxu0 %v1295_v6 }
  0x41   :  { %1166 = vmatpush3.bf16.msra.mxu1 %v1296_v7  ;;  %1191 = vmatprep.subr.bf16.mxu0 %v1313_v16 }
  0x42   :  { %1211 = vmatprep.subr.bf16.mxu1 %v1313_v16 }
  0x43   :  { %709 = vmatmul.mubr.bf16.vlgmr.msra.gmra.mxu0 %v999_v10 }
  0x44   :  { %750 = vmatmul.mubr.bf16.vlgmr.msra.gmra.mxu1 %v1001_v14  ;;  %1192 = vmatpush3.bf16.msra.mxu0 %v1297_v17 }
  0x45   :  { %1193 = vmatprep.subr.bf16.mxu0 %v1313_v16  ;;  %1207 = vmatprep.mubr.msk.bf16.mxu0 %vm1314_vm0, %v1313_v16 }
  0x46   :  { %1227 = vmatprep.mubr.msk.bf16.mxu1 %vm1314_vm0, %v1313_v16  ;;  %1212 = vmatpush3.bf16.msra.mxu1 %v1305_v25 }
  0x47   :  { %1213 = vmatprep.subr.bf16.mxu1 %v1313_v16 }
  0x48   :  { %1194 = vmatpush3.bf16.msra.mxu0 %v1298_v18 }
  0x49   :  { %1195 = vmatprep.subr.bf16.mxu0 %v1313_v16 }
  0x4a   :  { %1214 = vmatpush3.bf16.msra.mxu1 %v1306_v26 }
  0x4b   :  { %1215 = vmatprep.subr.bf16.mxu1 %v1313_v16 }
  0x4c   :  { %1196 = vmatpush3.bf16.msra.mxu0 %v1299_v19 }
  0x4d   :  { %1197 = vmatprep.subr.bf16.mxu0 %v1313_v16 }
  0x4e   :  { %1216 = vmatpush3.bf16.msra.mxu1 %v1307_v27 }
  0x4f   :  { %1217 = vmatprep.subr.bf16.mxu1 %v1313_v16 }
  0x50   :  { %1198 = vmatpush3.bf16.msra.mxu0 %v1300_v20 }
  0x51   :  { %1199 = vmatprep.subr.bf16.mxu0 %v1313_v16 }
  0x52   :  { %1218 = vmatpush3.bf16.msra.mxu1 %v1308_v28 }
  0x53   :  { %1219 = vmatprep.subr.bf16.mxu1 %v1313_v16 }
  0x54   :  { %1200 = vmatpush3.bf16.msra.mxu0 %v1301_v21 }
  0x55   :  { %1201 = vmatprep.subr.bf16.mxu0 %v1313_v16 }
  0x56   :  { %1220 = vmatpush3.bf16.msra.mxu1 %v1309_v29 }
  0x57   :  { %1221 = vmatprep.subr.bf16.mxu1 %v1313_v16 }
  0x58   :  { %1202 = vmatpush3.bf16.msra.mxu0 %v1302_v22 }
  0x59   :  { %1203 = vmatprep.subr.bf16.mxu0 %v1313_v16 }
  0x5a   :  { %1222 = vmatpush3.bf16.msra.mxu1 %v1310_v2 }
  0x5b   :  { %1223 = vmatprep.subr.bf16.mxu1 %v1313_v16 }
  0x5c   :  { %1204 = vmatpush3.bf16.msra.mxu0 %v1303_v23 }
  0x5d   :  { %1205 = vmatprep.subr.bf16.mxu0 %v1313_v16 }
  0x5e   :  { %1224 = vmatpush3.bf16.msra.mxu1 %v1311_v3 }
  0x5f   :  { %1225 = vmatprep.subr.bf16.mxu1 %v1313_v16 }
  0x60   :  { %1206 = vmatpush3.bf16.msra.mxu0 %v1304_v24 }
  0x62   :  { %1226 = vmatpush3.bf16.msra.mxu1 %v1312_v4 }
  0xe3   :  { %v1101_v30 = vpop.f32.mrf.mxu0 }
  0xe4   :  { %v1123_v31 = vpop.f32.mrf.mxu1 }
  0xe5   :  { %v1102_v32 = vpop.f32.mrf.mxu0 }
  0xe6   :  { %v1124_v33 = vpop.f32.mrf.mxu1  ;;  %v1103_v35 = vadd.f32 %v1102_v32, %v1101_v30 }
  0xe7   :  { %v1104_v34 = vpop.f32.mrf.mxu0  ;;  %v1125_v40 = vadd.f32 %v1124_v33, %v1123_v31 }
  0xe8   :  { %v1126_v36 = vpop.f32.mrf.mxu1  ;;  %v629_v39 = vadd.f32 %v1103_v35, %v994_v37 }
  0xe9   :  { %v1105_v38 = vpop.f32.mrf.mxu0 }
  0xea   :  { %v1106_v41 = vadd.f32 %v1105_v38, %v1104_v34  ;;  %v1127_v42 = vpop.f32.mrf.mxu1  ;;  %v670_v46 = vadd.f32 %v1125_v40, %v629_v39 }
  0xeb   :  { %v1128_v51 = vadd.f32 %v1127_v42, %v1126_v36 }
  0xec   :  { %v632_v47 = vadd.f32 %v1106_v41, %v994_v37 }
  0xee   :  { %v673_v55 = vadd.f32 %v1128_v51, %v632_v47 }
 0x103   :  { %v1145_v43 = vpop.f32.mrf.mxu0 }
 0x104   :  { %v1167_v44 = vpop.f32.mrf.mxu1 }
 0x105   :  { %v1146_v45 = vpop.f32.mrf.mxu0 }
 0x106   :  { %v1147_v48 = vadd.f32 %v1146_v45, %v1145_v43  ;;  %v1168_v49 = vpop.f32.mrf.mxu1 }
 0x107   :  { %v1148_v50 = vpop.f32.mrf.mxu0  ;;  %v1169_v56 = vadd.f32 %v1168_v49, %v1167_v44 }
 0x108   :  { %v711_v52 = vadd.f32 %v1147_v48, %v670_v46  ;;  %v1170_v53 = vpop.f32.mrf.mxu1 }
 0x109   :  { %v1149_v54 = vpop.f32.mrf.mxu0 }
 0x10a   :  { %v1150_v57 = vadd.f32 %v1149_v54, %v1148_v50  ;;  %v1171_v58 = vpop.f32.mrf.mxu1  ;;  %v752_v59 = vadd.f32 %v1169_v56, %v711_v52 }
 0x10b   :  { %v1172_v61 = vadd.f32 %v1171_v58, %v1170_v53 }
 0x10c   :  { %v714_v60 = vadd.f32 %v1150_v57, %v673_v55  ;;  %v758_v63 = vmax.f32 %v752_v59, 0.0 }
 0x10e   :  { %v755_v62 = vadd.f32 %v1172_v61, %v714_v60 }
 0x110   :  { %v759_v0 = vmax.f32 %v755_v62, 0.0 }
 0x112   :  { %v760_v1 = vpack.c.bf16 %v759_v0, %v758_v63 }
 0x114   :  { %1208 = vmatmul.mubr.bf16.vlgmr.msra.gmra.mxu0 %v760_v1 }
 0x1d4   :  { %v866_v6 = vpop.f32.mrf.mxu0 }
 0x1d5   :  { %v867_v8 = vadd.f32 %v1067_v5, %v866_v6 }
 0x1d6   :  { %v1209_v7 = vpop.f32.mrf.mxu0 }
 0x1d7   :  { %v873_v12 = vmax.f32 %v867_v8, 0.0 }
 0x1d8   :  { %v869_v9 = vpop.f32.mrf.mxu0 }
 0x1d9   :  { %v870_v10 = vadd.f32 %v1067_v5, %v869_v9 }
 0x1da   :  { %v1210_v11 = vpop.f32.mrf.mxu0 }
 0x1db   :  { %v874_v13 = vmax.f32 %v870_v10, 0.0 }
 0x1dd   :  { %v875_v14 = vpack.c.bf16 %v874_v13, %v873_v12 }
 0x1df   :  { %1228 = vmatmul.mubr.bf16.vlgmr.msra.gmra.mxu1 %v875_v14 }
 0x29f   :  { %v981_v16 = vpop.f32.mrf.mxu1 }
 0x2a0   :  { %v982_v17 = vadd.f32 %v1076_v15, %v981_v16 }
 0x2a1   :  { %v1229_v18 = vpop.f32.mrf.mxu1 }
 0x2a2   :  { %988 = vst [vmem:[%s1659_s7] sm:$0xff] %v982_v17 }
 0x2a3   :  { %v984_v19 = vpop.f32.mrf.mxu1 }
 0x2a4   :  { %v985_v20 = vadd.f32 %v1076_v15, %v984_v19 }
 0x2a5   :  { %v1230_v21 = vpop.f32.mrf.mxu1 }
 0x2a6   :  { %989 = vst [vmem:[%s1659_s7 + $0x8] sm:$0xff] %v985_v20 }

</bundles_post_ra>
